<compile_context>
chip_gen: v7x
topology: tpu7x:2x2x1
jax: 0.10.0
libtpu: 0.0.40
codegen_flags: <defaults>
</compile_context>

<pallas_src>
import functools

import jax
import jax.numpy as jnp
from jax.experimental import pallas as pl
from jax.experimental.pallas import tpu as pltpu


@functools.lru_cache(maxsize=None)
def _vmem_limit_bytes():
    """Generation-aware VMEM limit: ~3/4 of physical, capped at 96 MiB.

    v5e/v6e (128 MiB physical) -> 96 MiB; v7x (64 MiB physical) -> 48 MiB.
    """
    try:
        phys = int(pltpu.get_tpu_info().vmem_capacity_bytes)
    except Exception:
        phys = 64 * 1024 * 1024  # conservative default (v7x physical VMEM)
    return min((phys * 3) // 4, 96 * 1024 * 1024)


def _pick_tiles(B, K, N, vmem_budget):
    """Pick (tm, tn, tk) under `vmem_budget`.

    Priorities (from perf review):
      * tk = K whenever it fits  -> no accumulator read-modify-write K passes
      * tm as large as possible  -> full (K, N) weight streamed ceil(B/tm) times
      * tn large (lane-dense unmasked output stores), then split so that at
        least two "parallel" grid steps exist to feed both v7x TensorCores.
    """
    bpe_in, bpe_out = 2, 4  # bf16 inputs, f32 output

    def fits(tm, tn, tk):
        work = (
            2 * (tm + tn) * tk * bpe_in   # double-buffered x and W^T tiles
            + 2 * tm * tn * bpe_out       # output/accumulator tile
            + N * bpe_out                 # untiled bias
        )
        return work <= vmem_budget

    def shrink(v, full):
        # Next smaller legal block size: full extent or a multiple of 128.
        v = (full // 2 // 128) * 128 if v == full else v // 2
        return max(v, 128)

    tm = B if B <= 1024 else 1024
    tk = K if K <= 4096 else 4096
    tn = N if N <= 1024 else 1024

    # Shrink tn first, then tk, then tm, until the working set fits VMEM.
    while not fits(tm, tn, tk):
        if tn > 128:
            tn = shrink(tn, N)
        elif tk > 512:
            tk = shrink(tk, K)
        elif tm > 128:
            tm = shrink(tm, B)
        else:
            break

    # v7x shards "parallel" grid axes across its 2 TensorCores: make sure at
    # least two parallel steps exist (extra cost elsewhere is ~0.35us/step).
    if pl.cdiv(B, tm) == 1 and pl.cdiv(N, tn) == 1 and N % 256 == 0:
        tn = N // 2

    return tm, tn, tk


def _linear_relu_kernel(x_ref, w_ref, b_ref, o_ref, *, nk):
    """One (tm, tn) output tile; grid axis 2 (size nk) reduces over K.

    x_ref: (tm, tk)  bf16 activations
    w_ref: (tk, tn)  bf16 weight tile, already in (in, out) layout
    b_ref: (1,  N)   f32 full bias (untiled, single DMA)
    o_ref: (tm, tn)  f32 output tile (doubles as the accumulator)
    """
    j = pl.program_id(1)
    k = pl.program_id(2)
    tn = o_ref.shape[1]

    # Plain K-contraction: no in-kernel transpose of the weight tile.
    partial = jnp.dot(
        x_ref[...], w_ref[...], preferred_element_type=jnp.float32
    )

    j_off = pl.multiple_of(j * tn, tn)
    bias_tile = b_ref[:, pl.ds(j_off, tn)]  # (1, tn), broadcasts over tm

    if nk == 1:
        # Single K step: fuse bias add + ReLU into one store.
        o_ref[...] = jnp.maximum(partial + bias_tile, 0.0)
    else:
        @pl.when(k == 0)
        def _():
            o_ref[...] = partial + bias_tile  # fold bias into first write

        @pl.when(k > 0)
        def _():
            o_ref[...] += partial

        @pl.when(k == nk - 1)
        def _():
            o_ref[...] = jnp.maximum(o_ref[...], 0.0)


@jax.jit
def expand_output_classification(x, weight, bias):
    """ReLU(x @ weight.T + bias), matching nn.Linear(in, out) + nn.ReLU.

    x:      (B, K) float32
    weight: (N, K) float32   (PyTorch nn.Linear layout)
    bias:   (N,)   float32
    """
    B, K = x.shape
    N, K2 = weight.shape
    assert K == K2, "weight must be (out_features, in_features)"

    vmem_limit = _vmem_limit_bytes()
    tm, tn, tk = _pick_tiles(B, K, N, int(vmem_limit * 0.85))

    # One-time layout/dtype prep (fused transpose+cast under jit):
    x_bf = x.astype(jnp.bfloat16)
    w_kn = weight.T.astype(jnp.bfloat16)      # (K, N)
    b2 = bias.reshape(1, N).astype(jnp.float32)

    nk = pl.cdiv(K, tk)
    grid = (pl.cdiv(B, tm), pl.cdiv(N, tn), nk)

    return pl.pallas_call(
        functools.partial(_linear_relu_kernel, nk=nk),
        out_shape=jax.ShapeDtypeStruct((B, N), jnp.float32),
        grid_spec=pltpu.PrefetchScalarGridSpec(
            num_scalar_prefetch=0,
            grid=grid,
            in_specs=[
                pl.BlockSpec((tm, tk), lambda i, j, k: (i, k)),  # x tile
                pl.BlockSpec((tk, tn), lambda i, j, k: (k, j)),  # W^T tile (K,N)
                pl.BlockSpec((1, N), lambda i, j, k: (0, 0)),    # full bias
            ],
            out_specs=pl.BlockSpec((tm, tn), lambda i, j, k: (i, j)),
        ),
        compiler_params=pltpu.CompilerParams(
            dimension_semantics=("parallel", "parallel", "arbitrary"),
            vmem_limit_bytes=vmem_limit,
        ),
    )(x_bf, w_kn, b2)


def _init_params(key, in_features, out_features):
    """Deterministic synthetic init (PyTorch-style uniform bound)."""
    kw, kb = jax.random.split(key)
    bound = 1.0 / (in_features ** 0.5)
    weight = jax.random.uniform(
        kw, (out_features, in_features), jnp.float32, -bound, bound
    )
    bias = jax.random.uniform(kb, (out_features,), jnp.float32, -bound, bound)
    return weight, bias


if __name__ == "__main__":
    key = jax.random.PRNGKey(0)
    k_x, k_p = jax.random.split(key)

    # Module defaults are input_shape=output_shape=512; keep a small batch.
    batch = 16
    in_features = 512
    out_features = 512

    x = jax.random.normal(k_x, (batch, in_features), jnp.float32)
    weight, bias = _init_params(k_p, in_features, out_features)

    out = expand_output_classification(x, weight, bias)
    out = jax.block_until_ready(out)

    # Reference computed with the same bf16 operand rounding + f32 accumulation.
    x_r = x.astype(jnp.bfloat16).astype(jnp.float32)
    w_r = weight.astype(jnp.bfloat16).astype(jnp.float32)
    ref = jnp.maximum(x_r @ w_r.T + bias, 0.0)

    assert out.shape == (batch, out_features)
    assert out.dtype == jnp.float32
    assert jnp.allclose(out, ref, atol=2e-3, rtol=2e-3)

    print("KERNEL_OK")
</pallas_src>

<mosaic_0001>
module attributes {stable_mosaic.version = 11 : i64} {
  func.func @_linear_relu_kernel(%arg0: i32, %arg1: i32, %arg2: i32, %arg3: memref<16x512xbf16, #tpu.memory_space<vmem>>, %arg4: memref<512x256xbf16, #tpu.memory_space<vmem>>, %arg5: memref<1x512xf32, #tpu.memory_space<vmem>>, %arg6: memref<16x256xf32, #tpu.memory_space<vmem>>) attributes {dimension_semantics = [#tpu.dimension_semantics<parallel>, #tpu.dimension_semantics<parallel>, #tpu.dimension_semantics<arbitrary>], iteration_bounds = array<i64: 1, 2, 1>, scalar_prefetch = 0 : i64, scratch_operands = 0 : i64, tpu.core_type = #tpu.core_type<tc>, window_params = [{transform_indices = @transform_0, window_bounds = array<i64: 16, 512>}, {transform_indices = @transform_1, window_bounds = array<i64: 512, 256>}, {pipeline_mode = #tpu.pipeline_mode<synchronous>, transform_indices = @transform_2, window_bounds = array<i64: 1, 512>}, {transform_indices = @transform_3, window_bounds = array<i64: 16, 256>}]} {
    %c0 = arith.constant 0 : index
    %c0_0 = arith.constant 0 : index
    %0 = vector.load %arg3[%c0, %c0_0] : memref<16x512xbf16, #tpu.memory_space<vmem>>, vector<16x512xbf16>
    %c0_1 = arith.constant 0 : index
    %c0_2 = arith.constant 0 : index
    %1 = vector.load %arg4[%c0_1, %c0_2] : memref<512x256xbf16, #tpu.memory_space<vmem>>, vector<512x256xbf16>
    %cst = arith.constant dense<0.000000e+00> : vector<16x256xf32>
    %2 = tpu.matmul %0, %1, %cst {dimension_numbers = #tpu.dot_dimension_numbers<[1], [0], [0], [1], [0, 0, 1, 1], [], []>} : vector<16x512xbf16>, vector<512x256xbf16>, vector<16x256xf32> -> vector<16x256xf32>
    %c256_i32 = arith.constant 256 : i32
    %3 = arith.muli %arg1, %c256_i32 : i32
    %4 = tpu.assume_multiple %3, 256 : i32
    %c0_3 = arith.constant 0 : index
    %5 = arith.index_cast %4 : i32 to index
    %6 = vector.load %arg5[%c0_3, %5] : memref<1x512xf32, #tpu.memory_space<vmem>>, vector<1x256xf32>
    %7 = vector.broadcast %6 : vector<1x256xf32> to vector<16x256xf32>
    %8 = arith.addf %2, %7 : vector<16x256xf32>
    %cst_4 = arith.constant 0.000000e+00 : f32
    %9 = vector.broadcast %cst_4 : f32 to vector<16x256xf32>
    %10 = arith.maximumf %8, %9 : vector<16x256xf32>
    %c0_5 = arith.constant 0 : index
    %c0_6 = arith.constant 0 : index
    %11 = vector.load %arg6[%c0_5, %c0_6] : memref<16x256xf32, #tpu.memory_space<vmem>>, vector<16x256xf32>
    tpu.vector_store %arg6[%c0_5, %c0_6], %10 {strides = array<i32>} : memref<16x256xf32, #tpu.memory_space<vmem>>, vector<16x256xf32>,
    return
  }
  func.func @transform_0(%arg0: i32, %arg1: i32, %arg2: i32) -> (i32, i32) {
    %c0_i32 = arith.constant 0 : i32
    return %arg0, %arg2 : i32, i32
  }
  func.func @transform_1(%arg0: i32, %arg1: i32, %arg2: i32) -> (i32, i32) {
    %c0_i32 = arith.constant 0 : i32
    return %arg2, %arg1 : i32, i32
  }
  func.func @transform_2(%arg0: i32, %arg1: i32, %arg2: i32) -> (i32, i32) {
    %c0_i32 = arith.constant 0 : i32
    %c0_i32_0 = arith.constant 0 : i32
    %c0_i32_1 = arith.constant 0 : i32
    return %c0_i32, %c0_i32_0 : i32, i32
  }
  func.func @transform_3(%arg0: i32, %arg1: i32, %arg2: i32) -> (i32, i32) {
    %c0_i32 = arith.constant 0 : i32
    return %arg0, %arg1 : i32, i32
  }
}

</mosaic_0001>

<bundles_post_ra>
// kernel: expand_output_classification.1
= control target key start
LH: loop header
LB: loop body
LE: loop exit
PB: predicated region body
PF: predicated region fallthrough
CT: control target
= control target key end

     0   :  { %8 = vsyncpa [#allocation4], 0  ;;  %s1869_s0 = inlined_call_operand.vmem [shape: bf16[16,512], index: 0, kind: input, shape index: {}]   ;;  %s1870_s1 = inlined_call_operand.vmem [shape: bf16[512,512], index: 1, kind: input, shape index: {}]   ;;  %s1871_s2 = inlined_call_operand.vmem [shape: f32[1,512], index: 2, kind: input, shape index: {}]   ;;  %s1872_s3 = inlined_call_operand.hbm [shape: f32[16,512], index: 3, kind: output, shape index: {}]  }
   0x1   :  { %10 = vsyncpa [#allocation4 + $0x1], 0  ;;  %s1528_s12 = smov 0   ;;  %s1530_s13 = smov 0  }
   0x2   :  { %s1532_s14 = smov 0   ;;  %s1534_s15 = smov 0  }
   0x3   :  { %s1536_s16 = smov 0   ;;  %s1538_s17 = smov 0  }
   0x4 LB: > { %s1169_s18 = sadd.s32 4294967295, %s1502_s17   ;;  %s1170_s19 = sadd.s32 4294967294, %s1502_s17   ;;  %s1502_s17 = sphi %s1538_s17, %s16_s17   ;;  %s1498_s16 = sphi %s1536_s16, %s1879_s16   ;;  %s1494_s15 = sphi %s1534_s15, %s1878_s15   ;;  %s1490_s14 = sphi %s1532_s14, %s1877_s14   ;;  %s1486_s13 = sphi %s1530_s13, %s1876_s13   ;;  %s1482_s12 = sphi %s1528_s12, %s1875_s12  }
   0x5   : > { %s31_s20 = sadd.s32 1, %s1498_s16  ;;  %s72_s21 = sadd.s32 1, %s1490_s14 }
   0x6   : > { %p33_p0 = scmp.ge.s32.totalorder %s31_s20, 2  ;;  %p79_p1 = scmp.ne.s32.totalorder %s1490_s14, %s1486_s13 }
   0x7   : > { %p80_p2 = scmp.eq.s32.totalorder %s1502_s17, 0  ;;  %p132_p3 = scmp.eq.s32.totalorder %s1169_s18, 1 }
   0x8   : > { %s1881_s20 = smov (%p33_p0, %s31_s20), 0  ;;  %p137_p6 = scmp.ne.s32.totalorder %s1486_s13, %s1482_s12 }
   0x9   : > { %p81_p4 = por %p80_p2, %p79_p1  ;;  %p1567_p5 = por %p132_p3, %p79_p1 }
   0xa   : > { %s68_s23 = ssub.s32 %s1498_s16, %s1881_s20  ;;  %p138_p8 = scmp.eq.s32.totalorder %s1170_s19, 1 }
   0xb   : > { %p70_p7 = scmp.eq.s32.totalorder %s68_s23, 0  ;;  %p1173_p10 = scmp.ge.s32.totalorder %s1502_s17, 2 }
   0xc   : > { %p1578_p9 = por %p138_p8, %p137_p6 }
   0xd   : > { %s1576_s24 = scalar_select %p70_p7, %s1490_s14, %s72_s21  }
   0xe   : > { %172 = sbr.rel (%p1173_p10) target bundleno = 57 (0x39), region = 24 }
  0x15   : > { %175 = sbr.rel (!%p81_p4) target bundleno = 57 (0x39), region = 28  ;;  %s177_s26 = sand.u32 (%p81_p4), 1, %s1490_s14  }
  0x16   : > { %s1254_s27 = sshll.u32 (%p81_p4), %s1498_s16, 3  ;;  %s1174_s28 = sshll.u32 (%p81_p4), %s177_s26, 9 }
  0x17   : > { %s1590_s4 = scalar_lea.vmem (%p81_p4), %s1870_s1, %s1254_s27  ;;  %s1595_s5 = scalar_lea.vmem (%p81_p4), [#allocation2], %s1174_s28 }
  0x18   : > { %v339_v0 = vld [vmem:[%s1590_s4] sm:$0xff] (%p81_p4)  ;;  %v341_v1 = vld [vmem:[%s1590_s4 + $0x10] sm:$0xff] (%p81_p4) }
  0x19   : > { %v343_v2 = vld [vmem:[%s1590_s4 + $0x20] sm:$0xff] (%p81_p4)  ;;  %340 = vst [vmem:[%s1595_s5] sm:$0xff] (%p81_p4), %v339_v0  ;;  %342 = vst [vmem:[%s1595_s5 + $0x8] sm:$0xff] (%p81_p4), %v341_v1  ;;  %v345_v3 = vld [vmem:[%s1590_s4 + $0x30] sm:$0xff] (%p81_p4) }
  0x1a   : > { %344 = vst [vmem:[%s1595_s5 + $0x10] sm:$0xff] (%p81_p4), %v343_v2  ;;  %v347_v4 = vld [vmem:[%s1590_s4 + $0x40] sm:$0xff] (%p81_p4)  ;;  %v349_v5 = vld [vmem:[%s1590_s4 + $0x50] sm:$0xff] (%p81_p4)  ;;  %346 = vst [vmem:[%s1595_s5 + $0x18] sm:$0xff] (%p81_p4), %v345_v3 }
  0x1b   : > { %348 = vst [vmem:[%s1595_s5 + $0x20] sm:$0xff] (%p81_p4), %v347_v4  ;;  %350 = vst [vmem:[%s1595_s5 + $0x28] sm:$0xff] (%p81_p4), %v349_v5  ;;  %v351_v6 = vld [vmem:[%s1590_s4 + $0x60] sm:$0xff] (%p81_p4)  ;;  %v353_v7 = vld [vmem:[%s1590_s4 + $0x70] sm:$0xff] (%p81_p4) }
  0x1c   : > { %v355_v8 = vld [vmem:[%s1590_s4 + $0x80] sm:$0xff]  ;;  %352 = vst [vmem:[%s1595_s5 + $0x30] sm:$0xff] %v351_v6  ;;  %354 = vst [vmem:[%s1595_s5 + $0x38] sm:$0xff] %v353_v7  ;;  %v357_v9 = vld [vmem:[%s1590_s4 + $0x90] sm:$0xff] }
  0x1d   : > { %356 = vst [vmem:[%s1595_s5 + $0x40] sm:$0xff] %v355_v8  ;;  %v359_v10 = vld [vmem:[%s1590_s4 + $0xa0] sm:$0xff]  ;;  %v361_v11 = vld [vmem:[%s1590_s4 + $0xb0] sm:$0xff]  ;;  %358 = vst [vmem:[%s1595_s5 + $0x48] sm:$0xff] %v357_v9 }
  0x1e   : > { %360 = vst [vmem:[%s1595_s5 + $0x50] sm:$0xff] %v359_v10  ;;  %362 = vst [vmem:[%s1595_s5 + $0x58] sm:$0xff] %v361_v11  ;;  %v363_v12 = vld [vmem:[%s1590_s4 + $0xc0] sm:$0xff]  ;;  %v365_v13 = vld [vmem:[%s1590_s4 + $0xd0] sm:$0xff] }
  0x1f   : > { %v367_v14 = vld [vmem:[%s1590_s4 + $0xe0] sm:$0xff]  ;;  %364 = vst [vmem:[%s1595_s5 + $0x60] sm:$0xff] %v363_v12  ;;  %366 = vst [vmem:[%s1595_s5 + $0x68] sm:$0xff] %v365_v13  ;;  %v369_v15 = vld [vmem:[%s1590_s4 + $0xf0] sm:$0xff] }
  0x20   : > { %368 = vst [vmem:[%s1595_s5 + $0x70] sm:$0xff] %v367_v14  ;;  %v371_v16 = vld [vmem:[%s1590_s4 + $0x100] sm:$0xff]  ;;  %v373_v17 = vld [vmem:[%s1590_s4 + $0x110] sm:$0xff]  ;;  %370 = vst [vmem:[%s1595_s5 + $0x78] sm:$0xff] %v369_v15 }
  0x21   : > { %372 = vst [vmem:[%s1595_s5 + $0x80] sm:$0xff] %v371_v16  ;;  %374 = vst [vmem:[%s1595_s5 + $0x88] sm:$0xff] %v373_v17  ;;  %v375_v18 = vld [vmem:[%s1590_s4 + $0x120] sm:$0xff]  ;;  %v377_v19 = vld [vmem:[%s1590_s4 + $0x130] sm:$0xff] }
  0x22   : > { %v379_v20 = vld [vmem:[%s1590_s4 + $0x140] sm:$0xff]  ;;  %376 = vst [vmem:[%s1595_s5 + $0x90] sm:$0xff] %v375_v18  ;;  %378 = vst [vmem:[%s1595_s5 + $0x98] sm:$0xff] %v377_v19  ;;  %v381_v21 = vld [vmem:[%s1590_s4 + $0x150] sm:$0xff] }
  0x23   : > { %380 = vst [vmem:[%s1595_s5 + $0xa0] sm:$0xff] %v379_v20  ;;  %v383_v22 = vld [vmem:[%s1590_s4 + $0x160] sm:$0xff]  ;;  %v385_v23 = vld [vmem:[%s1590_s4 + $0x170] sm:$0xff]  ;;  %382 = vst [vmem:[%s1595_s5 + $0xa8] sm:$0xff] %v381_v21 }
  0x24   : > { %384 = vst [vmem:[%s1595_s5 + $0xb0] sm:$0xff] %v383_v22  ;;  %386 = vst [vmem:[%s1595_s5 + $0xb8] sm:$0xff] %v385_v23  ;;  %v387_v24 = vld [vmem:[%s1590_s4 + $0x180] sm:$0xff]  ;;  %v389_v25 = vld [vmem:[%s1590_s4 + $0x190] sm:$0xff] }
  0x25   : > { %v391_v26 = vld [vmem:[%s1590_s4 + $0x1a0] sm:$0xff]  ;;  %388 = vst [vmem:[%s1595_s5 + $0xc0] sm:$0xff] %v387_v24  ;;  %390 = vst [vmem:[%s1595_s5 + $0xc8] sm:$0xff] %v389_v25  ;;  %v393_v27 = vld [vmem:[%s1590_s4 + $0x1b0] sm:$0xff] }
  0x26   : > { %392 = vst [vmem:[%s1595_s5 + $0xd0] sm:$0xff] %v391_v26  ;;  %v395_v28 = vld [vmem:[%s1590_s4 + $0x1c0] sm:$0xff]  ;;  %v397_v29 = vld [vmem:[%s1590_s4 + $0x1d0] sm:$0xff]  ;;  %394 = vst [vmem:[%s1595_s5 + $0xd8] sm:$0xff] %v393_v27 }
  0x27   : > { %396 = vst [vmem:[%s1595_s5 + $0xe0] sm:$0xff] %v395_v28  ;;  %398 = vst [vmem:[%s1595_s5 + $0xe8] sm:$0xff] %v397_v29  ;;  %v399_v30 = vld [vmem:[%s1590_s4 + $0x1e0] sm:$0xff]  ;;  %v401_v31 = vld [vmem:[%s1590_s4 + $0x1f0] sm:$0xff] }
  0x28   : > { %v403_v32 = vld [vmem:[%s1590_s4 + $0x200] sm:$0xff]  ;;  %400 = vst [vmem:[%s1595_s5 + $0xf0] sm:$0xff] %v399_v30  ;;  %402 = vst [vmem:[%s1595_s5 + $0xf8] sm:$0xff] %v401_v31  ;;  %v405_v33 = vld [vmem:[%s1590_s4 + $0x210] sm:$0xff] }
  0x29   : > { %404 = vst [vmem:[%s1595_s5 + $0x100] sm:$0xff] %v403_v32  ;;  %v407_v34 = vld [vmem:[%s1590_s4 + $0x220] sm:$0xff]  ;;  %v409_v35 = vld [vmem:[%s1590_s4 + $0x230] sm:$0xff]  ;;  %406 = vst [vmem:[%s1595_s5 + $0x108] sm:$0xff] %v405_v33 }
  0x2a   : > { %408 = vst [vmem:[%s1595_s5 + $0x110] sm:$0xff] %v407_v34  ;;  %410 = vst [vmem:[%s1595_s5 + $0x118] sm:$0xff] %v409_v35  ;;  %v411_v36 = vld [vmem:[%s1590_s4 + $0x240] sm:$0xff]  ;;  %v413_v37 = vld [vmem:[%s1590_s4 + $0x250] sm:$0xff] }
  0x2b   : > { %v415_v38 = vld [vmem:[%s1590_s4 + $0x260] sm:$0xff]  ;;  %412 = vst [vmem:[%s1595_s5 + $0x120] sm:$0xff] %v411_v36  ;;  %414 = vst [vmem:[%s1595_s5 + $0x128] sm:$0xff] %v413_v37  ;;  %v417_v39 = vld [vmem:[%s1590_s4 + $0x270] sm:$0xff] }
  0x2c   : > { %416 = vst [vmem:[%s1595_s5 + $0x130] sm:$0xff] %v415_v38  ;;  %v419_v40 = vld [vmem:[%s1590_s4 + $0x280] sm:$0xff]  ;;  %v421_v41 = vld [vmem:[%s1590_s4 + $0x290] sm:$0xff]  ;;  %418 = vst [vmem:[%s1595_s5 + $0x138] sm:$0xff] %v417_v39 }
  0x2d   : > { %420 = vst [vmem:[%s1595_s5 + $0x140] sm:$0xff] %v419_v40  ;;  %422 = vst [vmem:[%s1595_s5 + $0x148] sm:$0xff] %v421_v41  ;;  %v423_v42 = vld [vmem:[%s1590_s4 + $0x2a0] sm:$0xff]  ;;  %v425_v43 = vld [vmem:[%s1590_s4 + $0x2b0] sm:$0xff] }
  0x2e   : > { %v427_v44 = vld [vmem:[%s1590_s4 + $0x2c0] sm:$0xff]  ;;  %424 = vst [vmem:[%s1595_s5 + $0x150] sm:$0xff] %v423_v42  ;;  %426 = vst [vmem:[%s1595_s5 + $0x158] sm:$0xff] %v425_v43  ;;  %v429_v45 = vld [vmem:[%s1590_s4 + $0x2d0] sm:$0xff] }
  0x2f   : > { %428 = vst [vmem:[%s1595_s5 + $0x160] sm:$0xff] %v427_v44  ;;  %v431_v46 = vld [vmem:[%s1590_s4 + $0x2e0] sm:$0xff]  ;;  %v433_v47 = vld [vmem:[%s1590_s4 + $0x2f0] sm:$0xff]  ;;  %430 = vst [vmem:[%s1595_s5 + $0x168] sm:$0xff] %v429_v45 }
  0x30   : > { %432 = vst [vmem:[%s1595_s5 + $0x170] sm:$0xff] %v431_v46  ;;  %434 = vst [vmem:[%s1595_s5 + $0x178] sm:$0xff] %v433_v47  ;;  %v435_v48 = vld [vmem:[%s1590_s4 + $0x300] sm:$0xff]  ;;  %v437_v49 = vld [vmem:[%s1590_s4 + $0x310] sm:$0xff] }
  0x31   : > { %v439_v50 = vld [vmem:[%s1590_s4 + $0x320] sm:$0xff]  ;;  %436 = vst [vmem:[%s1595_s5 + $0x180] sm:$0xff] %v435_v48  ;;  %438 = vst [vmem:[%s1595_s5 + $0x188] sm:$0xff] %v437_v49  ;;  %v441_v51 = vld [vmem:[%s1590_s4 + $0x330] sm:$0xff] }
  0x32   : > { %440 = vst [vmem:[%s1595_s5 + $0x190] sm:$0xff] %v439_v50  ;;  %v443_v52 = vld [vmem:[%s1590_s4 + $0x340] sm:$0xff]  ;;  %v445_v53 = vld [vmem:[%s1590_s4 + $0x350] sm:$0xff]  ;;  %442 = vst [vmem:[%s1595_s5 + $0x198] sm:$0xff] %v441_v51 }
  0x33   : > { %444 = vst [vmem:[%s1595_s5 + $0x1a0] sm:$0xff] %v443_v52  ;;  %446 = vst [vmem:[%s1595_s5 + $0x1a8] sm:$0xff] %v445_v53  ;;  %v447_v54 = vld [vmem:[%s1590_s4 + $0x360] sm:$0xff]  ;;  %v449_v55 = vld [vmem:[%s1590_s4 + $0x370] sm:$0xff] }
  0x34   : > { %v451_v56 = vld [vmem:[%s1590_s4 + $0x380] sm:$0xff]  ;;  %448 = vst [vmem:[%s1595_s5 + $0x1b0] sm:$0xff] %v447_v54  ;;  %450 = vst [vmem:[%s1595_s5 + $0x1b8] sm:$0xff] %v449_v55  ;;  %v453_v57 = vld [vmem:[%s1590_s4 + $0x390] sm:$0xff] }
  0x35   : > { %452 = vst [vmem:[%s1595_s5 + $0x1c0] sm:$0xff] %v451_v56  ;;  %v455_v58 = vld [vmem:[%s1590_s4 + $0x3a0] sm:$0xff]  ;;  %v457_v59 = vld [vmem:[%s1590_s4 + $0x3b0] sm:$0xff]  ;;  %454 = vst [vmem:[%s1595_s5 + $0x1c8] sm:$0xff] %v453_v57 }
  0x36   : > { %456 = vst [vmem:[%s1595_s5 + $0x1d0] sm:$0xff] %v455_v58  ;;  %458 = vst [vmem:[%s1595_s5 + $0x1d8] sm:$0xff] %v457_v59  ;;  %v459_v60 = vld [vmem:[%s1590_s4 + $0x3c0] sm:$0xff]  ;;  %v461_v61 = vld [vmem:[%s1590_s4 + $0x3d0] sm:$0xff] }
  0x37   : > { %v463_v62 = vld [vmem:[%s1590_s4 + $0x3e0] sm:$0xff]  ;;  %460 = vst [vmem:[%s1595_s5 + $0x1e0] sm:$0xff] %v459_v60  ;;  %462 = vst [vmem:[%s1595_s5 + $0x1e8] sm:$0xff] %v461_v61  ;;  %v465_v63 = vld [vmem:[%s1590_s4 + $0x3f0] sm:$0xff] }
  0x38   : > { %464 = vst [vmem:[%s1595_s5 + $0x1f0] sm:$0xff] %v463_v62  ;;  %466 = vst [vmem:[%s1595_s5 + $0x1f8] sm:$0xff] %v465_v63 }
  0x39 PF: > { %p1177_p11 = scmp.ge.s32.totalorder %s1502_s17, 1  ;;  %p471_p12 = scmp.lt.s32.totalorder %s1502_s17, 3 }
  0x3b   : > { %p472_p13 = pnand %p1177_p11, %p471_p12 }
  0x3c   : > { %s1725_s6 = sand.u32 (!%p472_p13), 1, %s1486_s13   ;;  %v1420_v0 = vld [vmem:[%s1869_s0 + $0x4] ss:$16 sps:$4 sm:$0xff] (!%p472_p13)   ;;  %v1423_v1 = vld [vmem:[%s1869_s0 + $0xc] ss:$16 sps:$4 sm:$0xff] (!%p472_p13)   ;;  %s1180_s27 = sshll.u32 (!%p472_p13), %s1494_s15, 8 }
  0x3d   : > { %475 = sbr.rel (%p472_p13) target bundleno = 365 (0x16d), region = 66  ;;  %s1178_s7 = sshll.u32 (!%p472_p13), %s1725_s6, 9  ;;  %983 = vmatprep.mubr.bf16.mxu1 (!%p472_p13), %v1420_v0  ;;  %1026 = vmatprep.mubr.bf16.mxu0 (!%p472_p13), %v1423_v1 }
  0x3e   : > { %s1734_s18 = scalar_lea.vmem (!%p472_p13), [#allocation2], %s1178_s7  ;;  %s596_s28 = sshra.s32 (!%p472_p13), %s1180_s27, 7 }
  0x3f   : > { %v1322_v2 = vld [vmem:[%s1734_s18 + $0x4] ss:$8 sps:$4 sm:$0xff] (!%p472_p13)   ;;  %v1326_v4 = vld [vmem:[%s1734_s18] ss:$8 sps:$4 sm:$0xff] (!%p472_p13)   ;;  %v1328_v6 = vld [vmem:[%s1734_s18 + $0x14] ss:$8 sps:$4 sm:$0xff] (!%p472_p13)   ;;  %s598_s4 = scalar_lea.vmem (!%p472_p13), %s1871_s2, %s596_s28  ;;  %s1818_s11 = scalar_lea.hbm (!%p472_p13), %s1872_s3, %s1180_s27 }
  0x40   : > { %v1324_v3 = vld [vmem:[%s1734_s18 + $0x104] ss:$8 sps:$4 sm:$0xff] (!%p472_p13)   ;;  %951 = vmatprep.subr.bf16.mxu1 (!%p472_p13), %v1322_v2  ;;  %v1327_v5 = vld [vmem:[%s1734_s18 + $0x100] ss:$8 sps:$4 sm:$0xff] (!%p472_p13)   ;;  %v1330_v7 = vld [vmem:[%s1734_s18 + $0x114] ss:$8 sps:$4 sm:$0xff] (!%p472_p13)  }
  0x41   : > { %994 = vmatprep.subr.bf16.mxu0 (!%p472_p13), %v1324_v3  ;;  %952 = vmatpush1.bf16.msra.mxu1 (!%p472_p13), %v1326_v4  ;;  %v1332_v8 = vld [vmem:[%s1734_s18 + $0x10] ss:$8 sps:$4 sm:$0xff] (!%p472_p13)   ;;  %v1334_v10 = vld [vmem:[%s1734_s18 + $0x24] ss:$8 sps:$4 sm:$0xff] (!%p472_p13)   ;;  %v1338_v12 = vld [vmem:[%s1734_s18 + $0x20] ss:$8 sps:$4 sm:$0xff] (!%p472_p13)   ;;  %v601_v4 = vlaneseq (!%p472_p13) }
  0x42   : > { %995 = vmatpush1.bf16.msra.mxu0 (!%p472_p13), %v1327_v5  ;;  %953 = vmatprep.subr.bf16.mxu1 (!%p472_p13), %v1328_v6  ;;  %v1333_v9 = vld [vmem:[%s1734_s18 + $0x110] ss:$8 sps:$4 sm:$0xff] (!%p472_p13)   ;;  %v1336_v11 = vld [vmem:[%s1734_s18 + $0x124] ss:$8 sps:$4 sm:$0xff] (!%p472_p13)   ;;  %v1339_v13 = vld [vmem:[%s1734_s18 + $0x120] ss:$8 sps:$4 sm:$0xff] (!%p472_p13)  }
  0x43   : > { %996 = vmatprep.subr.bf16.mxu0 (!%p472_p13), %v1330_v7  ;;  %v1340_v14 = vld [vmem:[%s1734_s18 + $0x34] ss:$8 sps:$4 sm:$0xff] (!%p472_p13)   ;;  %v1344_v16 = vld [vmem:[%s1734_s18 + $0x30] ss:$8 sps:$4 sm:$0xff] (!%p472_p13)   ;;  %v1346_v18 = vld [vmem:[%s1734_s18 + $0x44] ss:$8 sps:$4 sm:$0xff] (!%p472_p13)  }
  0x44   : > { %v1342_v15 = vld [vmem:[%s1734_s18 + $0x134] ss:$8 sps:$4 sm:$0xff]   ;;  %v1345_v17 = vld [vmem:[%s1734_s18 + $0x130] ss:$8 sps:$4 sm:$0xff]   ;;  %v1348_v19 = vld [vmem:[%s1734_s18 + $0x144] ss:$8 sps:$4 sm:$0xff]  }
  0x45   : > { %954 = vmatpush1.bf16.msra.mxu1 %v1332_v8  ;;  %v1350_v20 = vld [vmem:[%s1734_s18 + $0x40] ss:$8 sps:$4 sm:$0xff]   ;;  %v1352_v22 = vld [vmem:[%s1734_s18 + $0x54] ss:$8 sps:$4 sm:$0xff]   ;;  %v1356_v24 = vld [vmem:[%s1734_s18 + $0x50] ss:$8 sps:$4 sm:$0xff]  }
  0x46   : > { %997 = vmatpush1.bf16.msra.mxu0 %v1333_v9  ;;  %955 = vmatprep.subr.bf16.mxu1 %v1334_v10  ;;  %v1351_v21 = vld [vmem:[%s1734_s18 + $0x140] ss:$8 sps:$4 sm:$0xff]   ;;  %v1354_v23 = vld [vmem:[%s1734_s18 + $0x154] ss:$8 sps:$4 sm:$0xff]   ;;  %v1357_v25 = vld [vmem:[%s1734_s18 + $0x150] ss:$8 sps:$4 sm:$0xff]  }
  0x47   : > { %998 = vmatprep.subr.bf16.mxu0 %v1336_v11  ;;  %v1358_v26 = vld [vmem:[%s1734_s18 + $0x64] ss:$8 sps:$4 sm:$0xff]   ;;  %v1362_v28 = vld [vmem:[%s1734_s18 + $0x60] ss:$8 sps:$4 sm:$0xff]   ;;  %v1364_v30 = vld [vmem:[%s1734_s18 + $0x74] ss:$8 sps:$4 sm:$0xff]  }
  0x48   : > { %v1360_v27 = vld [vmem:[%s1734_s18 + $0x164] ss:$8 sps:$4 sm:$0xff]   ;;  %v1363_v29 = vld [vmem:[%s1734_s18 + $0x160] ss:$8 sps:$4 sm:$0xff]   ;;  %v1366_v31 = vld [vmem:[%s1734_s18 + $0x174] ss:$8 sps:$4 sm:$0xff]  }
  0x49   : > { %956 = vmatpush1.bf16.msra.mxu1 %v1338_v12  ;;  %v1368_v32 = vld [vmem:[%s1734_s18 + $0x70] ss:$8 sps:$4 sm:$0xff]   ;;  %v1370_v34 = vld [vmem:[%s1734_s18 + $0x84] ss:$8 sps:$4 sm:$0xff]   ;;  %v1374_v36 = vld [vmem:[%s1734_s18 + $0x80] ss:$8 sps:$4 sm:$0xff]  }
  0x4a   : > { %999 = vmatpush1.bf16.msra.mxu0 %v1339_v13  ;;  %957 = vmatprep.subr.bf16.mxu1 %v1340_v14  ;;  %v1369_v33 = vld [vmem:[%s1734_s18 + $0x170] ss:$8 sps:$4 sm:$0xff]   ;;  %v1372_v35 = vld [vmem:[%s1734_s18 + $0x184] ss:$8 sps:$4 sm:$0xff]   ;;  %v1375_v37 = vld [vmem:[%s1734_s18 + $0x180] ss:$8 sps:$4 sm:$0xff]  }
  0x4b   : > { %1000 = vmatprep.subr.bf16.mxu0 %v1342_v15  ;;  %v1376_v38 = vld [vmem:[%s1734_s18 + $0x94] ss:$8 sps:$4 sm:$0xff]   ;;  %v1380_v40 = vld [vmem:[%s1734_s18 + $0x90] ss:$8 sps:$4 sm:$0xff]   ;;  %v1382_v42 = vld [vmem:[%s1734_s18 + $0xa4] ss:$8 sps:$4 sm:$0xff]  }
  0x4c   : > { %v1378_v39 = vld [vmem:[%s1734_s18 + $0x194] ss:$8 sps:$4 sm:$0xff]   ;;  %v1381_v41 = vld [vmem:[%s1734_s18 + $0x190] ss:$8 sps:$4 sm:$0xff]   ;;  %v1384_v43 = vld [vmem:[%s1734_s18 + $0x1a4] ss:$8 sps:$4 sm:$0xff]  }
  0x4d   : > { %958 = vmatpush1.bf16.msra.mxu1 %v1344_v16  ;;  %v1386_v44 = vld [vmem:[%s1734_s18 + $0xa0] ss:$8 sps:$4 sm:$0xff]   ;;  %v1388_v46 = vld [vmem:[%s1734_s18 + $0xb4] ss:$8 sps:$4 sm:$0xff]   ;;  %v1392_v48 = vld [vmem:[%s1734_s18 + $0xb0] ss:$8 sps:$4 sm:$0xff]  }
  0x4e   : > { %1001 = vmatpush1.bf16.msra.mxu0 %v1345_v17  ;;  %959 = vmatprep.subr.bf16.mxu1 %v1346_v18  ;;  %v1387_v45 = vld [vmem:[%s1734_s18 + $0x1a0] ss:$8 sps:$4 sm:$0xff]   ;;  %v1390_v47 = vld [vmem:[%s1734_s18 + $0x1b4] ss:$8 sps:$4 sm:$0xff]   ;;  %v1393_v49 = vld [vmem:[%s1734_s18 + $0x1b0] ss:$8 sps:$4 sm:$0xff]  }
  0x4f   : > { %1002 = vmatprep.subr.bf16.mxu0 %v1348_v19  ;;  %v1394_v50 = vld [vmem:[%s1734_s18 + $0xc4] ss:$8 sps:$4 sm:$0xff]   ;;  %v1398_v52 = vld [vmem:[%s1734_s18 + $0xc0] ss:$8 sps:$4 sm:$0xff]   ;;  %v1400_v54 = vld [vmem:[%s1734_s18 + $0xd4] ss:$8 sps:$4 sm:$0xff]  }
  0x50   : > { %v1396_v51 = vld [vmem:[%s1734_s18 + $0x1c4] ss:$8 sps:$4 sm:$0xff]   ;;  %v1399_v53 = vld [vmem:[%s1734_s18 + $0x1c0] ss:$8 sps:$4 sm:$0xff]   ;;  %v1402_v55 = vld [vmem:[%s1734_s18 + $0x1d4] ss:$8 sps:$4 sm:$0xff]  }
  0x51   : > { %960 = vmatpush1.bf16.msra.mxu1 %v1350_v20  ;;  %v1404_v56 = vld [vmem:[%s1734_s18 + $0xd0] ss:$8 sps:$4 sm:$0xff]   ;;  %v1406_v58 = vld [vmem:[%s1734_s18 + $0xe4] ss:$8 sps:$4 sm:$0xff]   ;;  %v1410_v60 = vld [vmem:[%s1734_s18 + $0xe0] ss:$8 sps:$4 sm:$0xff]  }
  0x52   : > { %1003 = vmatpush1.bf16.msra.mxu0 %v1351_v21  ;;  %961 = vmatprep.subr.bf16.mxu1 %v1352_v22  ;;  %v1405_v57 = vld [vmem:[%s1734_s18 + $0x1d0] ss:$8 sps:$4 sm:$0xff]   ;;  %v1408_v59 = vld [vmem:[%s1734_s18 + $0x1e4] ss:$8 sps:$4 sm:$0xff]   ;;  %v1411_v61 = vld [vmem:[%s1734_s18 + $0x1e0] ss:$8 sps:$4 sm:$0xff]  }
  0x53   : > { %1004 = vmatprep.subr.bf16.mxu0 %v1354_v23  ;;  %v1412_v62 = vld [vmem:[%s1734_s18 + $0xf4] ss:$8 sps:$4 sm:$0xff]   ;;  %v1416_v0 = vld [vmem:[%s1734_s18 + $0xf0] ss:$8 sps:$4 sm:$0xff]   ;;  %v602_v5 = vshrl.u32 %v601_v4, 7  ;;  %s1179_s5 = sshll.u32 %s1725_s6, 5 }
  0x54   : > { %v1414_v63 = vld [vmem:[%s1734_s18 + $0x1f4] ss:$8 sps:$4 sm:$0xff]   ;;  %v1417_v1 = vld [vmem:[%s1734_s18 + $0x1f0] ss:$8 sps:$4 sm:$0xff]   ;;  %v599_v7 = vld [vmem:[%s598_s4] sm:$0x3] }
  0x55   : > { %962 = vmatpush1.bf16.msra.mxu1 %v1356_v24  ;;  %v1418_v2 = vld [vmem:[%s1869_s0] ss:$16 sps:$4 sm:$0xff]   ;;  %v1421_v3 = vld [vmem:[%s1869_s0 + $0x8] ss:$16 sps:$4 sm:$0xff]   ;;  %v603_v6 = vsub.s32 0, %v602_v5  ;;  %v607_v8 = vsub.s32 1, %v602_v5 }
  0x56   : > { %1005 = vmatpush1.bf16.msra.mxu0 %v1357_v25  ;;  %963 = vmatprep.subr.bf16.mxu1 %v1358_v26  ;;  %s510_s7 = scalar_lea.vmem [#allocation3], %s1179_s5  ;;  %s1046_s18 = scalar_lea.sflag [#allocation4], %s1725_s6 }
  0x57   : > { %1006 = vmatprep.subr.bf16.mxu0 %v1360_v27  ;;  %v604_v9 = vrot.slane %v599_v7, %v603_v6  ;;  %v608_v10 = vrot.slane %v599_v7, %v607_v8  ;;  %s1062_s8 = sshll.u32 %s510_s7, 4  ;;  %s1504_s19 = smov [#allocation3]   ;;  %s1820_s8 = int_to_ptr.vmem [resolvable:$true] %s1062_s8 }
  0x58   : > { %s1424_s15 = scalar_lea.vmem %s1820_s8, 512  ;;  %s1428_s21 = sshll.u32 %s1504_s19, 4  ;;  %s1429_s21 = int_to_ptr.vmem [resolvable:$false] %s1428_s21 }
  0x59   : > { %964 = vmatpush1.bf16.msra.mxu1 %v1362_v28  ;;  %p1425_p0 = scmp.ne.s32.totalorder %s1820_s8, %s1424_s15  ;;  %s1430_s23 = scalar_lea.vmem %s1429_s21, 1024 }
  0x5a   : > { %1007 = vmatpush1.bf16.msra.mxu0 %v1363_v29  ;;  %965 = vmatprep.subr.bf16.mxu1 %v1364_v30  ;;  %p1431_p3 = scmp.lt.s32.totalorder %s1820_s8, %s1429_s21  ;;  %p1432_p4 = scmp.lt.s32.totalorder %s1430_s23, %s1424_s15 }
  0x5b   : > { %1008 = vmatprep.subr.bf16.mxu0 %v1366_v31  ;;  %p1426_p1 = pnand %p1425_p0, %p1567_p5 }
  0x5c   : > { %p1433_p6 = por %p1432_p4, %p1431_p3 }
  0x5d   : > { %966 = vmatpush1.bf16.msra.mxu1 %v1368_v32  ;;  %p1427_p2 = pneg %p1426_p1 }
  0x5e   : > { %1009 = vmatpush1.bf16.msra.mxu0 %v1369_v33  ;;  %967 = vmatprep.subr.bf16.mxu1 %v1370_v34 }
  0x5f   : > { %1010 = vmatprep.subr.bf16.mxu0 %v1372_v35  ;;  %p1434_p7 = pnand %p1433_p6, %p1427_p2 }
  0x61   : > { %968 = vmatpush1.bf16.msra.mxu1 %v1374_v36 }
  0x62   : > { %1011 = vmatpush1.bf16.msra.mxu0 %v1375_v37  ;;  %969 = vmatprep.subr.bf16.mxu1 %v1376_v38 }
  0x63   : > { %1012 = vmatprep.subr.bf16.mxu0 %v1378_v39 }
  0x65   : > { %970 = vmatpush1.bf16.msra.mxu1 %v1380_v40 }
  0x66   : > { %1013 = vmatpush1.bf16.msra.mxu0 %v1381_v41  ;;  %971 = vmatprep.subr.bf16.mxu1 %v1382_v42 }
  0x67   : > { %1014 = vmatprep.subr.bf16.mxu0 %v1384_v43 }
  0x69   : > { %972 = vmatpush1.bf16.msra.mxu1 %v1386_v44 }
  0x6a   : > { %1015 = vmatpush1.bf16.msra.mxu0 %v1387_v45  ;;  %973 = vmatprep.subr.bf16.mxu1 %v1388_v46 }
  0x6b   : > { %1016 = vmatprep.subr.bf16.mxu0 %v1390_v47 }
  0x6d   : > { %974 = vmatpush1.bf16.msra.mxu1 %v1392_v48 }
  0x6e   : > { %1017 = vmatpush1.bf16.msra.mxu0 %v1393_v49  ;;  %975 = vmatprep.subr.bf16.mxu1 %v1394_v50 }
  0x6f   : > { %1018 = vmatprep.subr.bf16.mxu0 %v1396_v51 }
  0x71   : > { %976 = vmatpush1.bf16.msra.mxu1 %v1398_v52 }
  0x72   : > { %1019 = vmatpush1.bf16.msra.mxu0 %v1399_v53  ;;  %977 = vmatprep.subr.bf16.mxu1 %v1400_v54 }
  0x73   : > { %1020 = vmatprep.subr.bf16.mxu0 %v1402_v55 }
  0x75   : > { %978 = vmatpush1.bf16.msra.mxu1 %v1404_v56 }
  0x76   : > { %1021 = vmatpush1.bf16.msra.mxu0 %v1405_v57  ;;  %979 = vmatprep.subr.bf16.mxu1 %v1406_v58 }
  0x77   : > { %1022 = vmatprep.subr.bf16.mxu0 %v1408_v59 }
  0x79   : > { %980 = vmatpush1.bf16.msra.mxu1 %v1410_v60 }
  0x7a   : > { %1023 = vmatpush1.bf16.msra.mxu0 %v1411_v61  ;;  %981 = vmatprep.subr.bf16.mxu1 %v1412_v62 }
  0x7b   : > { %1024 = vmatprep.subr.bf16.mxu0 %v1414_v63 }
  0x7d   : > { %982 = vmatpush1.bf16.msra.mxu1 %v1416_v0 }
  0x7e   : > { %1025 = vmatpush1.bf16.msra.mxu0 %v1417_v1 }
  0x80   : > { %984 = vmatmul.mubr.bf16.vlgmr.msra.gmra.mrb[0].mxu1 %v1418_v2 }
  0x81   : > { %1027 = vmatmul.mubr.bf16.vlgmr.msra.gmra.mrb[0].mxu0 %v1421_v3 }
 0x153   : > { %v985_v11 = vpop.f32.mrb[0].mxu1 }
 0x154   : > { %v1028_v12 = vpop.f32.mrb[0].mxu0  ;;  %v986_v13 = vadd.f32 %v985_v11, %v604_v9  ;;  %v987_v14 = vpop.f32.mrb[1].mxu1 }
 0x155   : > { %v1030_v15 = vpop.f32.mrb[1].mxu0  ;;  %v988_v16 = vadd.f32 %v987_v14, %v608_v10  ;;  %v989_v17 = vpop.f32.mrb[2].mxu1 }
 0x156   : > { %v1032_v18 = vpop.f32.mrb[2].mxu0  ;;  %v1029_v19 = vadd.f32 %v1028_v12, %v986_v13  ;;  %v990_v20 = vadd.f32 %v989_v17, %v604_v9  ;;  %v991_v21 = vpop.f32.mrb[3].mxu1 }
 0x157   : > { %v1034_v22 = vpop.f32.mrb[3].mxu0  ;;  %v1031_v23 = vadd.f32 %v1030_v15, %v988_v16  ;;  %v992_v24 = vadd.f32 %v991_v21, %v608_v10 }
 0x158   : > { %v1037_v25 = vmax.f32 %v1029_v19, 0.0  ;;  %v1033_v26 = vadd.f32 %v1032_v18, %v990_v20 }
 0x159   : > { %v1038_v27 = vmax.f32 %v1031_v23, 0.0  ;;  %v1035_v28 = vadd.f32 %v1034_v22, %v992_v24 }
 0x15a   : > { %1041 = vst [vmem:[%s510_s7] sm:$0xff] %v1037_v25  ;;  %v1039_v29 = vmax.f32 %v1033_v26, 0.0 }
 0x15b   : > { %1042 = vst [vmem:[%s510_s7 + $0x8] sm:$0xff] %v1038_v27  ;;  %v1040_v30 = vmax.f32 %v1035_v28, 0.0 }
 0x15c   : > { %1043 = vst [vmem:[%s510_s7 + $0x10] sm:$0xff] %v1039_v29 }
 0x15d   : > { %1044 = vst [vmem:[%s510_s7 + $0x18] sm:$0xff] %v1040_v30 }
 0x15e   : > { %1437 = shalt.err (!%p1434_p7)
}
 0x15f   : > { %s1438_s26 = scalar_lea.hbm %s1818_s11, 512  ;;  %s1442_s29 = scalar_lea.hbm %s1872_s3, 1024 }
 0x160   : > { %p1439_p8 = scmp.ne.s32.totalorder %s1818_s11, %s1438_s26  ;;  %p1443_p13 = scmp.lt.u32.totalorder %s1818_s11, %s1872_s3 }
 0x161   : > { %p1444_p0 = scmp.lt.u32.totalorder %s1442_s29, %s1438_s26  ;;  %p1446_p2 = scmp.lt.u32.totalorder %s1438_s26, %s1818_s11 }
 0x162   : > { %p1440_p11 = pnand %p1439_p8, %p1567_p5 }
 0x163   : > { %p1445_p1 = por %p1444_p0, %p1443_p13 }
 0x164   : > { %p1441_p12 = pneg %p1440_p11 }
 0x165   : > { %p1447_p3 = por %p1446_p2, %p1445_p1 }
 0x167   : > { %p1448_p4 = pnand %p1447_p3, %p1441_p12 }
 0x169   : > { %1451 = shalt.err (!%p1448_p4)
}
 0x16a   : > { %s1505_s5 = smov 256   ;;  %s1506_s7 = smov 512  }
 0x16b   : > { %s1507_s9 = smov 16  }
 0x16c   : > { %1264 = dma.vmem_to_hbm [thread:$0]  (%p1567_p5), %s1820_s8, 512, %s1818_s11, %s1046_s18, %s1505_s5, %s1506_s7, %s1507_s9  }
 0x16d PF: > { %s1077_s10 = sand.u32 1, %s1482_s12   ;;  %p1267_p6 = pnand %p1173_p10, %p1578_p9 }
 0x16e   : > { %s1078_s15 = scalar_lea.sflag [#allocation4], %s1077_s10 }
 0x16f   : > { %1477 = dma.done.wait (!%p1267_p6), %s1078_s15, 512  }
 0x170   : > { %1479 = vsyncadd (!%p1267_p6), %s1078_s15, 4294966784  ;;  %s16_s17 = sadd.s32 1, %s1502_s17   ;;  %s1875_s12 = smov %s1486_s13 }
 0x171   : > { %p13_p7 = scmp.ge.s32.totalorder %s16_s17, 4   ;;  %s1876_s13 = smov %s1490_s14 }
 0x172   : > { %s1877_s14 = smov %s1576_s24  ;;  %s1878_s15 = smov %s1498_s16 }
 0x173   : > { %s1879_s16 = smov %s1881_s20  ;;  %15 = sbr.rel (!%p13_p7) target bundleno = 4 (0x4), region = 114 }
 0x17a   :  { %1083 = vsyncpa [#allocation4], 1 }
 0x17b   :  { %1085 = vsyncpa [#allocation4 + $0x1], 1 }

</bundles_post_ra>
